<compile_context>
chip_gen: v7x
topology: tpu7x:2x2x1
jax: 0.10.0
libtpu: 0.0.40
codegen_flags: <defaults>
</compile_context>

<pallas_src>
import functools

import jax
import jax.numpy as jnp
from jax.experimental import pallas as pl
from jax.experimental.pallas import tpu as pltpu

_NEG = -1e30  # finite "-inf" sentinel: every intermediate stays finite, exp(_NEG) == 0


def _round_up(a, b):
    return ((a + b - 1) // b) * b


def _pointnet_softmax_avg_kernel(bounds_ref, x_ref, w_ref, b_ref, acc_ref, m_ref, *,
                                 feat_dim, n_total, tile_n, tiles_per_split):
    s = pl.program_id(0)          # split index ("parallel": sharded across TCs on v7x)
    i = pl.program_id(1)          # row tile within the split ("arbitrary": reduction)
    C = feat_dim

    @pl.when(i == 0)
    def _init():
        acc_ref[...] = jnp.zeros_like(acc_ref)       # [Cp, B] unnormalized partial sums
        m_ref[...] = jnp.full_like(m_ref, _NEG)      # [1, B]  per-segment running max

    # Global row ids of this tile, computed from the UNclamped tile index: rows past N
    # (tail of the last real tile, or whole dead tiles whose DMA index was clamped) are
    # masked below, so the clamped DMA can never double-count real rows.
    t = s * tiles_per_split + i
    n_idx = t * tile_n + jax.lax.broadcasted_iota(jnp.int32, (tile_n, 1), 0)      # [tN, 1]
    row_valid = n_idx < n_total                                                    # [tN, 1]

    # Zero invalid rows BEFORE the matmul: overhanging block regions hold unspecified
    # bits and 0 * NaN inside the dot would poison the accumulator.
    x = x_ref[...]
    x = jnp.where(row_valid, x, jnp.zeros_like(x))                                 # [tN, C]

    # Fused feat_lin + weight_lin (+ ones column): a single lane-dense MXU matmul.
    y = jnp.dot(x, w_ref[...], preferred_element_type=jnp.float32) + b_ref[...]   # [tN, Cp]
    logit = y[:, C:C + 1]                                                          # [tN, 1]

    # Segment membership from CSR bounds: two broadcast compares (no per-segment loop).
    lo = bounds_ref[0:1, :]                                                        # [1, B]
    hi = bounds_ref[1:2, :]                                                        # [1, B]
    mask = jnp.logical_and(n_idx >= lo, n_idx < hi)                                # [tN, B]

    # Online softmax (flash-attention style), entirely in row ([1, B]) layout.
    scores = jnp.where(mask, logit, _NEG)                                          # [tN, B]
    tile_max = jnp.max(scores, axis=0, keepdims=True)                              # [1, B]
    m_old = m_ref[...]
    m_new = jnp.maximum(m_old, tile_max)                                           # [1, B]
    alpha = jnp.exp(m_old - m_new)                                                 # [1, B]
    m_ref[...] = m_new

    # Fused mask + max-shift + exp: where mask holds, m_new >= logit so exp <= 1;
    # elsewhere exp(_NEG) == 0 (this also covers segments this split never sees, for
    # which m_new is still _NEG).
    p = jnp.exp(jnp.where(mask, logit - m_new, _NEG))                              # [tN, B]

    # Per-segment weighted sums on the MXU, transposed so the accumulator rescale is a
    # plain sublane-broadcast multiply (no diag matmul, no lane<->sublane relayout):
    #   contrib[c, b] = sum_n p[n, b] * y[n, c]
    # (column C+1 of y is the constant 1, so contrib[C+1, :] is the softmax denominator.)
    contrib = jax.lax.dot_general(
        y, p, dimension_numbers=(((0,), (0,)), ((), ())),
        preferred_element_type=jnp.float32)                                        # [Cp, B]

    acc_ref[...] = acc_ref[...] * alpha + contrib


def pointnet_avg_softmax(x, point_key, weight_lin_w, weight_lin_b, feat_lin_w, feat_lin_b,
                         *, tile_n=2048, num_splits=2, compute_dtype=jnp.bfloat16):
    """PointNetAvg forward (avg_mode='softmax', cat_dirs_mode='none', net=None).

    x:             [N, C] f32 point features (channel-last, like torch.nn.Linear input)
    point_key:     [B+1] int32 CSR offsets (sorted, point_key[0] == 0, point_key[B] <= N)
    weight_lin_w:  [1, C] torch Linear .weight,  weight_lin_b: [1]
    feat_lin_w:    [C, C] torch Linear .weight,  feat_lin_b:   [C]
    tile_n:        row tile streamed per grid step (multiple of 8); sweep 2048-8192.
    num_splits:    leading "parallel" grid axis splitting the point stream (gives both
                   v7x TensorCores work; on 1-TC chips it simply serializes).
    compute_dtype: dtype x / fused weight are streamed and fed to the MXU in.  Default
                   bf16 (half the HBM bytes, 2x MXU rate on v6e/v7x); accumulation is
                   always f32.  Use jnp.float32 for f32-reference-tight softmax weights.
    returns        [B, C] f32.  (Empty segments return 0 — a documented divergence from
                   the reference, which never produces such rows.)
    """
    N, C = x.shape
    B = point_key.shape[0] - 1

    # Lane-dense fused width: feat (C) | logit (1) | ones (1), padded to a multiple of 128.
    Cp = max(128, _round_up(C + 2, 128))

    # Row tile: multiple of 8 sublanes, no larger than N rounded up. x is NOT padded —
    # overhanging / dead tiles are masked in-kernel.
    tile_n = max(8, (min(tile_n, _round_up(N, 8)) // 8) * 8)
    grid_n = pl.cdiv(N, tile_n)
    num_splits = max(1, min(num_splits, grid_n))
    tps = pl.cdiv(grid_n, num_splits)                      # row tiles per split

    # Fuse weight_lin into feat_lin: one [C, Cp] weight + one [1, Cp] f32 bias.
    w_fused = jnp.zeros((C, Cp), jnp.float32)
    w_fused = w_fused.at[:, :C].set(feat_lin_w.T)          # feat_lin (x @ W.T)
    w_fused = w_fused.at[:, C].set(weight_lin_w[0])        # weight_lin logit column
    b_fused = jnp.zeros((1, Cp), jnp.float32)
    b_fused = b_fused.at[0, :C].set(feat_lin_b)
    b_fused = b_fused.at[0, C].set(weight_lin_b[0])
    b_fused = b_fused.at[0, C + 1].set(1.0)                # ones column -> softmax denom

    # bf16 (or f32) streaming of the dominant x stream + the tiny resident weight.
    x_c = x.astype(compute_dtype)
    w_c = w_fused.astype(compute_dtype)

    point_key = point_key.astype(jnp.int32)
    bounds = jnp.stack([point_key[:-1], point_key[1:]], axis=0)    # [2, B] CSR (lo, hi)

    kernel = functools.partial(_pointnet_softmax_avg_kernel, feat_dim=C, n_total=N,
                               tile_n=tile_n, tiles_per_split=tps)

    last_blk = grid_n - 1
    # Clamp fully-dead tiles onto the last real block; their rows are masked in-kernel.
    x_index_map = lambda s, i: (jnp.minimum(s * tps + i, last_blk), 0)

    itemsize = jnp.dtype(compute_dtype).itemsize
    cost = pl.CostEstimate(
        flops=2 * N * Cp * (C + B),
        transcendentals=N * B,
        bytes_accessed=N * C * itemsize + C * Cp * itemsize + Cp * 4
                       + num_splits * (Cp + 1) * B * 4 + 2 * B * 4)

    acc_parts, m_parts = pl.pallas_call(
        kernel,
        out_shape=(jax.ShapeDtypeStruct((num_splits, Cp, B), jnp.float32),
                   jax.ShapeDtypeStruct((num_splits, 1, B), jnp.float32)),
        grid_spec=pltpu.PrefetchScalarGridSpec(
            num_scalar_prefetch=0,
            grid=(num_splits, tps),
            in_specs=[
                pl.BlockSpec((2, B), lambda s, i: (0, 0)),        # CSR bounds (resident)
                pl.BlockSpec((tile_n, C), x_index_map),           # x: streamed row tiles
                pl.BlockSpec((C, Cp), lambda s, i: (0, 0)),       # fused weight (resident)
                pl.BlockSpec((1, Cp), lambda s, i: (0, 0)),       # fused bias (resident)
            ],
            out_specs=(
                pl.BlockSpec((None, Cp, B), lambda s, i: (s, 0, 0)),  # per-split partials
                pl.BlockSpec((None, 1, B), lambda s, i: (s, 0, 0)),   # per-split running max
            ),
        ),
        compiler_params=pltpu.CompilerParams(
            dimension_semantics=("parallel", "arbitrary"),
            vmem_limit_bytes=32 * 1024 * 1024),
        cost_estimate=cost,
    )(bounds, x_c, w_c, b_fused)

    # Tiny XLA epilogue: online-softmax merge of the per-split partials + deferred
    # normalization + transpose back to [B, C].
    m_glob = jnp.max(m_parts, axis=0)                       # [1, B]
    scale = jnp.exp(m_parts - m_glob)                       # [S, 1, B]
    acc = jnp.sum(acc_parts * scale, axis=0)                # [Cp, B]
    denom = acc[C + 1, :]                                   # [B] sum of softmax numerators
    denom = jnp.where(denom > 0.0, denom, 1.0)              # empty segments -> 0 (no 0/0)
    return (acc[:C, :] / denom[None, :]).T                  # [B, C]


def _reference(x, point_key_host, Ww, bw, Wf, bf):
    # Pure-JAX reference of the PyTorch forward (net=None, cat_dirs_mode='none',
    # avg_mode='softmax'); torch Linear: y = x @ W.T + b.
    logit = x @ Ww.T + bw                          # [N, 1]
    feat = x @ Wf.T + bf                           # [N, C]
    outs = []
    for b in range(len(point_key_host) - 1):
        lo, hi = int(point_key_host[b]), int(point_key_host[b + 1])
        w = jax.nn.softmax(logit[lo:hi], axis=0)          # softmax_csr within the segment
        outs.append(jnp.sum(w * feat[lo:hi], axis=0))     # segment_csr sum
    return jnp.stack(outs, axis=0)


if __name__ == "__main__":
    key = jax.random.PRNGKey(0)
    N, C, B = 50, 32, 4                        # points, net_channels, segments
    k_x, k_wf, k_bf, k_ww, k_bw, k_d = jax.random.split(key, 6)

    x = jax.random.normal(k_x, (N, C), dtype=jnp.float32)
    # point_dirs would be concatenated by cat_dirs(); cat_dirs_mode='none' -> unused.
    point_dirs = jax.random.normal(k_d, (N, 6), dtype=jnp.float32)  # noqa: F841
    point_key = jnp.array([0, 7, 20, 37, 50], dtype=jnp.int32)      # CSR offsets, [B+1]

    # PyTorch Linear parameter shapes: W [out, in], b [out].
    Wf = 0.1 * jax.random.normal(k_wf, (C, C), dtype=jnp.float32)   # feat_lin.weight
    bf = 0.1 * jax.random.normal(k_bf, (C,), dtype=jnp.float32)     # feat_lin.bias
    Ww = 0.1 * jax.random.normal(k_ww, (1, C), dtype=jnp.float32)   # weight_lin.weight
    bw = 0.1 * jax.random.normal(k_bw, (1,), dtype=jnp.float32)     # weight_lin.bias

    ref = _reference(x, jax.device_get(point_key), Ww, bw, Wf, bf)

    # f32 path, small tiles: 4 row tiles over 2 splits.  Segments straddle a tile boundary
    # (row 16) and the split boundary (row 32), and the last tile has 14 masked tail rows
    # (no jnp.pad) — exercises online-softmax rescale, cross-split merge and tail masking.
    out_f32 = pointnet_avg_softmax(x, point_key, Ww, bw, Wf, bf,
                                   tile_n=16, num_splits=2, compute_dtype=jnp.float32)
    out_f32 = jax.block_until_ready(out_f32)
    assert out_f32.shape == (B, C)
    assert jnp.allclose(out_f32, ref, atol=2e-5, rtol=2e-5), "f32 kernel mismatch vs reference"

    # Default performance config: bf16 streaming, large row tile (clamped to N here).
    out_bf16 = pointnet_avg_softmax(x, point_key, Ww, bw, Wf, bf)
    out_bf16 = jax.block_until_ready(out_bf16)
    assert out_bf16.shape == (B, C)
    assert jnp.allclose(out_bf16, ref, atol=5e-2, rtol=5e-2), "bf16 kernel mismatch vs reference"

    print("KERNEL_OK")
</pallas_src>

<mosaic_0001>
module attributes {stable_mosaic.version = 11 : i64} {
  func.func @_pointnet_softmax_avg_kernel(%arg0: i32, %arg1: i32, %arg2: memref<2x4xi32, #tpu.memory_space<vmem>>, %arg3: memref<16x32xf32, #tpu.memory_space<vmem>>, %arg4: memref<32x128xf32, #tpu.memory_space<vmem>>, %arg5: memref<1x128xf32, #tpu.memory_space<vmem>>, %arg6: memref<1x128x4xf32, #tpu.memory_space<vmem>>, %arg7: memref<1x1x4xf32, #tpu.memory_space<vmem>>) attributes {dimension_semantics = [#tpu.dimension_semantics<parallel>, #tpu.dimension_semantics<arbitrary>], iteration_bounds = array<i64: 2, 2>, scalar_prefetch = 0 : i64, scratch_operands = 0 : i64, tpu.core_type = #tpu.core_type<tc>, window_params = [{pipeline_mode = #tpu.pipeline_mode<synchronous>, transform_indices = @transform_0, window_bounds = array<i64: 2, 4>}, {transform_indices = @transform_1, window_bounds = array<i64: 16, 32>}, {pipeline_mode = #tpu.pipeline_mode<synchronous>, transform_indices = @transform_2, window_bounds = array<i64: 32, 128>}, {pipeline_mode = #tpu.pipeline_mode<synchronous>, transform_indices = @transform_3, window_bounds = array<i64: 1, 128>}, {transform_indices = @transform_4, window_bounds = array<i64: 1, 128, 4>}, {transform_indices = @transform_5, window_bounds = array<i64: 1, 1, 4>}]} {
    %c0_i32 = arith.constant 0 : i32
    %0 = arith.cmpi eq, %arg1, %c0_i32 : i32
    %1 = arith.extui %0 : i1 to i32
    %c0_i32_0 = arith.constant 0 : i32
    %2 = arith.cmpi ne, %1, %c0_i32_0 : i32
    scf.if %2 {
      %cst_26 = arith.constant 0.000000e+00 : f32
      %60 = vector.broadcast %cst_26 : f32 to vector<128x4xf32>
      %c0_27 = arith.constant 0 : index
      %c0_28 = arith.constant 0 : index
      %c0_29 = arith.constant 0 : index
      %61 = vector.load %arg6[%c0_27, %c0_28, %c0_29] : memref<1x128x4xf32, #tpu.memory_space<vmem>>, vector<1x128x4xf32>
      %62 = vector.shape_cast %61 : vector<1x128x4xf32> to vector<128x4xf32>
      %63 = vector.shape_cast %60 : vector<128x4xf32> to vector<1x128x4xf32>
      tpu.vector_store %arg6[%c0_27, %c0_28, %c0_29], %63 {strides = array<i32>} : memref<1x128x4xf32, #tpu.memory_space<vmem>>, vector<1x128x4xf32>,
      %cst_30 = arith.constant -1.000000e+30 : f32
      %64 = vector.broadcast %cst_30 : f32 to vector<1x4xf32>
      %c0_31 = arith.constant 0 : index
      %c0_32 = arith.constant 0 : index
      %c0_33 = arith.constant 0 : index
      %65 = vector.load %arg7[%c0_31, %c0_32, %c0_33] : memref<1x1x4xf32, #tpu.memory_space<vmem>>, vector<1x1x4xf32>
      %66 = vector.shape_cast %65 : vector<1x1x4xf32> to vector<1x4xf32>
      %67 = vector.shape_cast %64 : vector<1x4xf32> to vector<1x1x4xf32>
      tpu.vector_store %arg7[%c0_31, %c0_32, %c0_33], %67 {strides = array<i32>} : memref<1x1x4xf32, #tpu.memory_space<vmem>>, vector<1x1x4xf32>,
    } else {
    }
    %c2_i32 = arith.constant 2 : i32
    %3 = arith.muli %arg0, %c2_i32 : i32
    %4 = arith.addi %3, %arg1 : i32
    %c16_i32 = arith.constant 16 : i32
    %5 = arith.muli %4, %c16_i32 : i32
    %6 = tpu.iota {dimensions = array<i32: 0>} : vector<16x1xi32>
    %7 = vector.broadcast %5 : i32 to vector<16x1xi32>
    %8 = arith.addi %7, %6 : vector<16x1xi32>
    %c50_i32 = arith.constant 50 : i32
    %9 = vector.broadcast %c50_i32 : i32 to vector<16x1xi32>
    %10 = arith.cmpi slt, %8, %9 : vector<16x1xi32>
    %c0 = arith.constant 0 : index
    %c0_1 = arith.constant 0 : index
    %11 = vector.load %arg3[%c0, %c0_1] : memref<16x32xf32, #tpu.memory_space<vmem>>, vector<16x32xf32>
    %cst = arith.constant 0.000000e+00 : f32
    %12 = vector.broadcast %cst : f32 to vector<16x32xf32>
    %13 = vector.shape_cast %10 : vector<16x1xi1> to vector<16x1xi1>
    %14 = vector.broadcast %13 : vector<16x1xi1> to vector<16x32xi1>
    %15 = arith.select %14, %11, %12 : vector<16x32xi1>, vector<16x32xf32>
    %c0_2 = arith.constant 0 : index
    %c0_3 = arith.constant 0 : index
    %16 = vector.load %arg4[%c0_2, %c0_3] : memref<32x128xf32, #tpu.memory_space<vmem>>, vector<32x128xf32>
    %cst_4 = arith.constant dense<0.000000e+00> : vector<16x128xf32>
    %17 = tpu.matmul %15, %16, %cst_4 {dimension_numbers = #tpu.dot_dimension_numbers<[1], [0], [0], [1], [0, 0, 1, 1], [], []>} : vector<16x32xf32>, vector<32x128xf32>, vector<16x128xf32> -> vector<16x128xf32>
    %c0_5 = arith.constant 0 : index
    %c0_6 = arith.constant 0 : index
    %18 = vector.load %arg5[%c0_5, %c0_6] : memref<1x128xf32, #tpu.memory_space<vmem>>, vector<1x128xf32>
    %19 = vector.broadcast %18 : vector<1x128xf32> to vector<16x128xf32>
    %20 = arith.addf %17, %19 : vector<16x128xf32>
    %21 = vector.extract_strided_slice %20 {offsets = [0, 32], sizes = [16, 1], strides = [1, 1]} : vector<16x128xf32> to vector<16x1xf32>
    %c0_7 = arith.constant 0 : index
    %c0_8 = arith.constant 0 : index
    %22 = vector.load %arg2[%c0_7, %c0_8] : memref<2x4xi32, #tpu.memory_space<vmem>>, vector<1x4xi32>
    %c1 = arith.constant 1 : index
    %c0_9 = arith.constant 0 : index
    %23 = vector.load %arg2[%c1, %c0_9] : memref<2x4xi32, #tpu.memory_space<vmem>>, vector<1x4xi32>
    %24 = vector.broadcast %8 : vector<16x1xi32> to vector<16x4xi32>
    %25 = vector.broadcast %22 : vector<1x4xi32> to vector<16x4xi32>
    %26 = arith.cmpi sge, %24, %25 : vector<16x4xi32>
    %27 = vector.broadcast %8 : vector<16x1xi32> to vector<16x4xi32>
    %28 = vector.broadcast %23 : vector<1x4xi32> to vector<16x4xi32>
    %29 = arith.cmpi slt, %27, %28 : vector<16x4xi32>
    %30 = arith.andi %26, %29 : vector<16x4xi1>
    %cst_10 = arith.constant -1.000000e+30 : f32
    %31 = vector.shape_cast %21 : vector<16x1xf32> to vector<16x1xf32>
    %32 = vector.broadcast %31 : vector<16x1xf32> to vector<16x4xf32>
    %33 = vector.broadcast %cst_10 : f32 to vector<16x4xf32>
    %34 = arith.select %30, %32, %33 : vector<16x4xi1>, vector<16x4xf32>
    %cst_11 = arith.constant dense<0xFF800000> : vector<4xf32>
    %35 = vector.multi_reduction <maximumf>, %34, %cst_11 [0] : vector<16x4xf32> to vector<4xf32>
    %36 = vector.shape_cast %35 : vector<4xf32> to vector<1x4xf32>
    %c0_12 = arith.constant 0 : index
    %c0_13 = arith.constant 0 : index
    %c0_14 = arith.constant 0 : index
    %37 = vector.load %arg7[%c0_12, %c0_13, %c0_14] : memref<1x1x4xf32, #tpu.memory_space<vmem>>, vector<1x1x4xf32>
    %38 = vector.shape_cast %37 : vector<1x1x4xf32> to vector<1x4xf32>
    %39 = arith.maximumf %38, %36 : vector<1x4xf32>
    %40 = arith.subf %38, %39 : vector<1x4xf32>
    %41 = math.exp %40 : vector<1x4xf32>
    %c0_15 = arith.constant 0 : index
    %c0_16 = arith.constant 0 : index
    %c0_17 = arith.constant 0 : index
    %42 = vector.load %arg7[%c0_15, %c0_16, %c0_17] : memref<1x1x4xf32, #tpu.memory_space<vmem>>, vector<1x1x4xf32>
    %43 = vector.shape_cast %42 : vector<1x1x4xf32> to vector<1x4xf32>
    %44 = vector.shape_cast %39 : vector<1x4xf32> to vector<1x1x4xf32>
    tpu.vector_store %arg7[%c0_15, %c0_16, %c0_17], %44 {strides = array<i32>} : memref<1x1x4xf32, #tpu.memory_space<vmem>>, vector<1x1x4xf32>,
    %45 = vector.broadcast %21 : vector<16x1xf32> to vector<16x4xf32>
    %46 = vector.broadcast %39 : vector<1x4xf32> to vector<16x4xf32>
    %47 = arith.subf %45, %46 : vector<16x4xf32>
    %cst_18 = arith.constant -1.000000e+30 : f32
    %48 = vector.broadcast %cst_18 : f32 to vector<16x4xf32>
    %49 = arith.select %30, %47, %48 : vector<16x4xi1>, vector<16x4xf32>
    %50 = math.exp %49 : vector<16x4xf32>
    %cst_19 = arith.constant dense<0.000000e+00> : vector<128x4xf32>
    %51 = tpu.matmul %20, %50, %cst_19 {dimension_numbers = #tpu.dot_dimension_numbers<[0], [0], [1], [1], [0, 1, 1, 1], [], []>} : vector<16x128xf32>, vector<16x4xf32>, vector<128x4xf32> -> vector<128x4xf32>
    %c0_20 = arith.constant 0 : index
    %c0_21 = arith.constant 0 : index
    %c0_22 = arith.constant 0 : index
    %52 = vector.load %arg6[%c0_20, %c0_21, %c0_22] : memref<1x128x4xf32, #tpu.memory_space<vmem>>, vector<1x128x4xf32>
    %53 = vector.shape_cast %52 : vector<1x128x4xf32> to vector<128x4xf32>
    %54 = vector.broadcast %41 : vector<1x4xf32> to vector<128x4xf32>
    %55 = arith.mulf %53, %54 : vector<128x4xf32>
    %56 = arith.addf %55, %51 : vector<128x4xf32>
    %c0_23 = arith.constant 0 : index
    %c0_24 = arith.constant 0 : index
    %c0_25 = arith.constant 0 : index
    %57 = vector.load %arg6[%c0_23, %c0_24, %c0_25] : memref<1x128x4xf32, #tpu.memory_space<vmem>>, vector<1x128x4xf32>
    %58 = vector.shape_cast %57 : vector<1x128x4xf32> to vector<128x4xf32>
    %59 = vector.shape_cast %56 : vector<128x4xf32> to vector<1x128x4xf32>
    tpu.vector_store %arg6[%c0_23, %c0_24, %c0_25], %59 {strides = array<i32>} : memref<1x128x4xf32, #tpu.memory_space<vmem>>, vector<1x128x4xf32>,
    return
  }
  func.func @transform_0(%arg0: i32, %arg1: i32) -> (i32, i32) {
    %c0_i32 = arith.constant 0 : i32
    %c0_i32_0 = arith.constant 0 : i32
    %c0_i32_1 = arith.constant 0 : i32
    return %c0_i32, %c0_i32_0 : i32, i32
  }
  func.func @transform_1(%arg0: i32, %arg1: i32) -> (i32, i32) {
    %c2_i32 = arith.constant 2 : i32
    %0 = arith.muli %arg0, %c2_i32 : i32
    %1 = arith.addi %0, %arg1 : i32
    %c3_i32 = arith.constant 3 : i32
    %2 = arith.minsi %1, %c3_i32 : i32
    %c0_i32 = arith.constant 0 : i32
    %c0_i32_0 = arith.constant 0 : i32
    return %2, %c0_i32 : i32, i32
  }
  func.func @transform_2(%arg0: i32, %arg1: i32) -> (i32, i32) {
    %c0_i32 = arith.constant 0 : i32
    %c0_i32_0 = arith.constant 0 : i32
    %c0_i32_1 = arith.constant 0 : i32
    return %c0_i32, %c0_i32_0 : i32, i32
  }
  func.func @transform_3(%arg0: i32, %arg1: i32) -> (i32, i32) {
    %c0_i32 = arith.constant 0 : i32
    %c0_i32_0 = arith.constant 0 : i32
    %c0_i32_1 = arith.constant 0 : i32
    return %c0_i32, %c0_i32_0 : i32, i32
  }
  func.func @transform_4(%arg0: i32, %arg1: i32) -> (i32, i32, i32) {
    %c0_i32 = arith.constant 0 : i32
    %c0_i32_0 = arith.constant 0 : i32
    %c0_i32_1 = arith.constant 0 : i32
    return %arg0, %c0_i32, %c0_i32_0 : i32, i32, i32
  }
  func.func @transform_5(%arg0: i32, %arg1: i32) -> (i32, i32, i32) {
    %c0_i32 = arith.constant 0 : i32
    %c0_i32_0 = arith.constant 0 : i32
    %c0_i32_1 = arith.constant 0 : i32
    return %arg0, %c0_i32, %c0_i32_0 : i32, i32, i32
  }
}

</mosaic_0001>

<bundles_post_ra>
// kernel: tpu_custom_call.1
= control target key start
LH: loop header
LB: loop body
LE: loop exit
PB: predicated region body
PF: predicated region fallthrough
CT: control target
= control target key end

     0   :  { %11 = vsyncpa [#allocation3], 0  ;;  %s1540_s0 = inlined_call_operand.vmem [shape: s32[2,4], index: 0, kind: input, shape index: {}]   ;;  %s1541_s1 = inlined_call_operand.vmem [shape: f32[50,32], index: 1, kind: input, shape index: {}]   ;;  %s1542_s2 = inlined_call_operand.vmem [shape: f32[32,128], index: 2, kind: input, shape index: {}]   ;;  %s1543_s3 = inlined_call_operand.vmem [shape: f32[1,128], index: 3, kind: input, shape index: {}]   ;;  %s1544_s4 = inlined_call_operand.vmem [shape: f32[2,128,4], index: 4, kind: output, shape index: {0}]   ;;  %s1545_s5 = inlined_call_operand.hbm [shape: f32[2,1,4], index: 5, kind: output, shape index: {1}]  }
   0x1   :  { %13 = vsyncpa [#allocation3 + $0x1], 0  ;;  %s1228_s18 = smov 0   ;;  %s1230_s19 = smov 0  }
   0x2   :  { %s1232_s20 = smov 0   ;;  %s1234_s21 = smov 0  }
   0x3   :  { %s1236_s22 = smov 0   ;;  %s1238_s23 = smov 0  }
   0x4   :  { %s1240_s24 = smov 0   ;;  %s1242_s25 = smov 0  }
   0x5 LB: > { %s899_s26 = sadd.s32 4294967295, %s1192_s25   ;;  %s900_s27 = sadd.s32 4294967294, %s1192_s25   ;;  %s1192_s25 = sphi %s1242_s25, %s19_s25   ;;  %s1188_s24 = sphi %s1240_s24, %s1565_s24   ;;  %s1184_s23 = sphi %s1238_s23, %s1564_s23   ;;  %s1180_s22 = sphi %s1236_s22, %s1563_s22   ;;  %s1176_s21 = sphi %s1234_s21, %s1562_s21   ;;  %s1172_s20 = sphi %s1232_s20, %s1561_s20   ;;  %s1168_s19 = sphi %s1230_s19, %s1560_s19   ;;  %s1164_s18 = sphi %s1228_s18, %s1559_s18  }
   0x6   : > { %s28_s28 = sadd.s32 1, %s1184_s23  ;;  %s31_s29 = sadd.s32 1, %s1188_s24 }
   0x7   : > { %p29_p0 = scmp.ge.s32.totalorder %s28_s28, 2  ;;  %p171_p1 = scmp.ne.s32.totalorder %s1172_s20, %s1168_s19 }
   0x8   : > { %p172_p2 = scmp.eq.s32.totalorder %s899_s26, 3  ;;  %p177_p4 = scmp.ne.s32.totalorder %s1168_s19, %s1164_s18 }
   0x9   : > { %s1567_s28 = smov (%p29_p0, %s28_s28), 0  ;;  %s1569_s29 = smov (!%p29_p0, %s31_s29), %s1188_s24 }
   0xa   : > { %1547 = sst [smem:[#allocation5_spill]] %s1567_s28  ;;  %p1277_p3 = por %p172_p2, %p171_p1 }
   0xb   : > { %p33_p5 = scmp.ge.s32.totalorder %s1569_s29, 2  ;;  %p178_p6 = scmp.eq.s32.totalorder %s900_s27, 3 }
   0xc   : > { %p905_p7 = scmp.ge.s32.totalorder %s1192_s25, 1  ;;  %p230_p8 = scmp.lt.s32.totalorder %s1192_s25, 5 }
   0xd   : > { %s1571_s29 = smov (%p33_p5, %s1569_s29), 0  ;;  %p1287_p9 = por %p178_p6, %p177_p4 }
   0xe   : > { %1549 = sst [smem:[#allocation6_spill]] %s1571_s29  ;;  %p231_p10 = pnand %p905_p7, %p230_p8 }
   0xf   : > { %s158_s7 = ssub.s32 %s1188_s24, %s1571_s29  ;;  %s161_s8 = sadd.s32 1, %s1172_s20 }
  0x10   : > { %p159_p11 = scmp.eq.s32.totalorder %s158_s7, 0  ;;  %234 = sbr.rel (%p231_p10) target bundleno = 669 (0x29d), region = 36 }
  0x11   : > { %s906_s11 = sshll.u32 (!%p231_p10), %s1180_s22, 1  ;;  %p292_p13 = scmp.lt.s32.totalorder (!%p231_p10), %s1180_s22, 1 }
  0x12   : > { %s1295_s9 = scalar_select %p159_p11, %s1172_s20, %s161_s8  }
  0x13   : > { %s1300_s12 = sadd.s32 (!%p231_p10), %s1176_s21, %s906_s11  ;;  %s1551_s29 = sand.u32 (!%p231_p10), 1, %s1168_s19  }
  0x14   : > { %p272_p12 = scmp.lt.s32.totalorder (!%p231_p10), %s1300_s12, 3  ;;  %s1318_s28 = scalar_lea.vmem (!%p231_p10), [#allocation2], %s1551_s29 }
  0x15   : > { %p911_p1 = scmp.ne.s32.totalorder (!%p231_p10), %s1176_s21, 0 }
  0x17   : > { %s273_s13 = scalar_select %p272_p12, %s1300_s12, 3 }
  0x18   : > { %s293_s14 = scalar_select %p292_p13, %s1180_s22, 1 }
  0x19   : > { %s907_s15 = sshll.u32 %s273_s13, 1  ;;  %300 = sbr.rel (%p911_p1) target bundleno = 36 (0x24), region = 40  ;;  %vm301_vm0 = vcmask (!%p911_p1), 31744   ;;  %vm318_vm1 = vcmask (!%p911_p1), 24576   ;;  %v1194_v0 = vmov (!%p911_p1), 0.0  }
  0x1a   : > { %p279_p0 = scmp.lt.s32.totalorder %s907_s15, 6  ;;  %s938_s16 = sshll.u32 %s293_s14, 7  ;;  %v1195_v1 = vmov (!%p911_p1), -1e+30  }
  0x1b   : > { %s1309_s27 = scalar_lea.vmem %s1544_s4, %s938_s16  ;;  %319 = vst.msk [vmem:[%s1318_s28] sm:$0x1] (!%p911_p1), %vm318_vm1, %v1195_v1 }
  0x1c   : > { %s1573_s15 = smov (!%p279_p0, %s907_s15), 6  ;;  %302 = vst.msk [vmem:[%s1309_s27] sm:$0xff] (!%p911_p1), %vm301_vm0, %v1194_v0  ;;  %303 = vst.msk [vmem:[%s1309_s27 + $0x8] sm:$0xff] (!%p911_p1), %vm301_vm0, %v1194_v0 }
  0x1d   : > { %s908_s7 = sshll.u32 %s1573_s15, 3  ;;  %304 = vst.msk [vmem:[%s1309_s27 + $0x10] sm:$0xff] (!%p911_p1), %vm301_vm0, %v1194_v0  ;;  %305 = vst.msk [vmem:[%s1309_s27 + $0x18] sm:$0xff] (!%p911_p1), %vm301_vm0, %v1194_v0 }
  0x1e   : > { %s1314_s11 = scalar_lea.vmem %s1541_s1, %s908_s7  ;;  %306 = vst.msk [vmem:[%s1309_s27 + $0x20] sm:$0xff] (!%p911_p1), %vm301_vm0, %v1194_v0  ;;  %307 = vst.msk [vmem:[%s1309_s27 + $0x28] sm:$0xff] (!%p911_p1), %vm301_vm0, %v1194_v0 }
  0x1f   : > { %308 = vst.msk [vmem:[%s1309_s27 + $0x30] sm:$0xff] (!%p911_p1), %vm301_vm0, %v1194_v0  ;;  %309 = vst.msk [vmem:[%s1309_s27 + $0x38] sm:$0xff] (!%p911_p1), %vm301_vm0, %v1194_v0 }
  0x20   : > { %310 = vst.msk [vmem:[%s1309_s27 + $0x40] sm:$0xff] %vm301_vm0, %v1194_v0  ;;  %311 = vst.msk [vmem:[%s1309_s27 + $0x48] sm:$0xff] %vm301_vm0, %v1194_v0 }
  0x21   : > { %312 = vst.msk [vmem:[%s1309_s27 + $0x50] sm:$0xff] %vm301_vm0, %v1194_v0  ;;  %313 = vst.msk [vmem:[%s1309_s27 + $0x58] sm:$0xff] %vm301_vm0, %v1194_v0 }
  0x22   : > { %314 = vst.msk [vmem:[%s1309_s27 + $0x60] sm:$0xff] %vm301_vm0, %v1194_v0  ;;  %315 = vst.msk [vmem:[%s1309_s27 + $0x68] sm:$0xff] %vm301_vm0, %v1194_v0 }
  0x23   : > { %316 = vst.msk [vmem:[%s1309_s27 + $0x70] sm:$0xff] %vm301_vm0, %v1194_v0  ;;  %317 = vst.msk [vmem:[%s1309_s27 + $0x78] sm:$0xff] %vm301_vm0, %v1194_v0 }
  0x24 PF: > { %v339_v2 = vld [vmem:[%s1542_s2] sm:$0xff]  ;;  %v340_v3 = vld [vmem:[%s1542_s2 + $0x8] sm:$0xff]  ;;  %v341_v4 = vld [vmem:[%s1542_s2 + $0x10] sm:$0xff]  ;;  %s913_s16 = sshll.u32 %s1300_s12, 4  ;;  %v323_v5 = vlaneseq  ;;  %vm350_vm2 = vcmask 261120   ;;  %v1196_v18 = vmov 32  }
  0x25   : > { %v1002_v6 = vpack.c.bf16 %v340_v3, %v339_v2  ;;  %v342_v7 = vld [vmem:[%s1542_s2 + $0x18] sm:$0xff]  ;;  %v326_v8 = vstv %s913_s16  ;;  %v331_v13 = vld [vmem:[%s1314_s11] sm:$0xff]  ;;  %v332_v15 = vld [vmem:[%s1314_s11 + $0x8] sm:$0xff]  ;;  %1091 = vset.pattern.permute.xlu0 %v1196_v18  ;;  %vm523_vm7 = vcmask 130048   ;;  %vm460_vm12 = vcmask 31744   ;;  %s935_s10 = sshll.u32 %s1180_s22, 4 }
  0x26   : > { %v1006_v9 = vpack.c.bf16 %v342_v7, %v341_v4  ;;  %v1368_v10 = vshrl.u32 %v323_v5, 7  ;;  %v914_v19 = vld [vmem:[%s1543_s3] ss:$0 sm:$0xff]  ;;  %v918_v25 = vld [vmem:[%s1540_s0 + $0x1] ss:$0 sm:$0xff]  ;;  %vm475_vm13 = vcmask 24576   ;;  %s1426_s15 = scalar_lea.hbm %s1545_s5, %s935_s10 }
  0x27   : > { %1003 = vmatprep.subr.bf16.mxu0 %v1002_v6  ;;  %v917_v24 = vld [vmem:[%s1540_s0] ss:$0 sm:$0xff]  ;;  %s808_s16 = sshll.u32 %s1318_s28, 4  ;;  %s1556_s17 = sand.u32 1, %s1168_s19   ;;  %s809_s16 = int_to_ptr.vmem [resolvable:$true] %s808_s16 }
  0x28   : > { %1005 = vmatpush3.bf16.msra.mxu0 %v1002_v6  ;;  %v325_v11 = vadd.s32 8, %v1368_v10  ;;  %v327_v12 = vadd.s32 %v326_v8, %v1368_v10  ;;  %v470_v45 = vld [vmem:[%s1318_s28] sm:$0x1]  ;;  %v480_v46 = vsub.s32 0, %v1368_v10  ;;  %s793_s26 = scalar_lea.sflag [#allocation3], %s1556_s17  ;;  %s1098_s12 = scalar_lea.vmem %s809_s16, 16 }
  0x29   : > { %1007 = vmatprep.subr.bf16.mxu0 %v1006_v9  ;;  %p1099_p2 = scmp.ne.s32.totalorder %s809_s16, %s1098_s12  ;;  %s1197_s7 = smov [#allocation2]  }
  0x2a   : > { %v328_v14 = vadd.s32 %v326_v8, %v325_v11  ;;  %vm329_vm3 = vcmp.lt.s32.totalorder %v327_v12, 50  ;;  %vm438_vm5 = vcmp.ge.s32.totalorder %v327_v12, %v917_v24  ;;  %vm444_vm6 = vcmp.lt.s32.totalorder %v327_v12, %v918_v25  ;;  %s1102_s8 = sshll.u32 %s1197_s7, 4  ;;  %s1103_s8 = int_to_ptr.vmem [resolvable:$false] %s1102_s8 }
  0x2b   : > { %v337_v16 = vsel %vm329_vm3, %v331_v13, 0.0  ;;  %vm1383_vm10 = vmand %vm438_vm5, %vm444_vm6  ;;  %p1100_p4 = pnand %p1099_p2, %p1277_p3  ;;  %s1104_s11 = scalar_lea.vmem %s1103_s8, 32 }
  0x2c   : > { %1009 = vmatpush3.bf16.msra.mxu0 %v1006_v9  ;;  %971 = vmatprep.mubr.msk.f32.mxu0 %vm350_vm2, %v337_v16  ;;  %vm330_vm4 = vcmp.lt.s32.totalorder %v328_v14, 50  ;;  %vm439_vm8 = vcmp.ge.s32.totalorder %v328_v14, %v917_v24  ;;  %vm445_vm9 = vcmp.lt.s32.totalorder %v328_v14, %v918_v25  ;;  %p1105_p6 = scmp.lt.s32.totalorder %s809_s16, %s1103_s8  ;;  %p1106_p7 = scmp.lt.s32.totalorder %s1104_s11, %s1098_s12 }
  0x2d   : > { %v338_v17 = vsel %vm330_vm4, %v332_v15, 0.0  ;;  %vm1388_vm11 = vmand %vm439_vm8, %vm445_vm9  ;;  %p1101_p5 = pneg %p1100_p4 }
  0x2e   : > { %p1107_p8 = por %p1106_p7, %p1105_p6 }
  0x2f   : > { %972 = vmatmul.mubr.msk.f32.vlgmr.msra.gmra.mrb[0].mxu0 %vm350_vm2, %v338_v17 }
  0x30   : > { %p1108_p10 = pnand %p1107_p8, %p1101_p5 }
 0x102   : > { %v973_v20 = vpop.f32.mrb[0].mxu0 }
 0x103   : > { %v423_v21 = vpop.f32.mrb[1].mxu0  ;;  %v429_v23 = vadd.f32 %v973_v20, %v914_v19 }
 0x104   : > { %v424_v22 = vadd.f32 %v914_v19, %v423_v21 }
 0x106   : > { %491 = vxpose.xlu1.b32.start [1/2] (short) %v424_v22, 128  ;;  %450 = vperm.xlu0 %1091, %v424_v22  }
 0x10a   : > { %492 = vxpose.xlu1.b32.end [2/2] (short) %v429_v23, 128  ;;  %455 = vperm.xlu0 %1091, %v429_v23  }
 0x185   : > { %v451_v27 = vpop.permute.xlu0 %450 }
 0x186   : > { %v507_v28 = vpop.trf.xlu1  ;;  %v458_v30 = vsel %vm1383_vm10, %v451_v27, -1e+30 }
 0x187   : > { %978 = vmatprep.mubr.msk.f32.mxu0 %vm523_vm7, %v507_v28  ;;  %v461_v34 = vsel %vm460_vm12, %v458_v30, -inf }
 0x189   : > { %v456_v31 = vpop.permute.xlu0 %455 }
 0x18a   : > { %v459_v32 = vsel %vm1388_vm11, %v456_v31, -1e+30  ;;  %v508_v33 = vpop.trf.xlu1 }
 0x18b   : > { %v462_v35 = vsel %vm460_vm12, %v459_v32, -inf }
 0x18c   : > { %v463_v36 = vmax.f32 %v461_v34, %v462_v35 }
 0x18e   : > { %v464_v37 = vrot.slane %v463_v36, 4  ;;  %v509_v38 = vpop.trf.xlu1 }
 0x190   : > { %v465_v39 = vmax.f32 %v463_v36, %v464_v37 }
 0x192   : > { %v466_v40 = vrot.slane %v465_v39, 2  ;;  %v510_v41 = vpop.trf.xlu1 }
 0x194   : > { %v467_v42 = vmax.f32 %v465_v39, %v466_v40 }
 0x196   : > { %v468_v43 = vrot.slane %v467_v42, 1  ;;  %v511_v44 = vpop.trf.xlu1 }
 0x198   : > { %v469_v47 = vmax.f32 %v467_v42, %v468_v43 }
 0x19a   : > { %v471_v48 = vmax.f32 %v470_v45, %v469_v47  ;;  %v512_v49 = vpop.trf.xlu1 }
 0x19c   : > { %v472_v50 = vsub.f32 %v470_v45, %v471_v48  ;;  %v481_v51 = vrot.slane %v471_v48, %v480_v46  ;;  %476 = vst.msk [vmem:[%s1318_s28] sm:$0x1] %vm475_vm13, %v471_v48 }
 0x19e   : > { %v473_v52 = vmul.f32 1.442695, %v472_v50  ;;  %v483_v53 = vsub.f32 %v451_v27, %v481_v51  ;;  %v484_v54 = vsub.f32 %v456_v31, %v481_v51  ;;  %v513_v55 = vpop.trf.xlu1 }
 0x19f   : > { %987 = vmatprep.mubr.msk.f32.mxu1 %vm523_vm7, %v513_v55 }
 0x1a0   : > { %1092 = vpow2.f32 %v473_v52  ;;  %v485_v56 = vsel %vm1383_vm10, %v483_v53, -1e+30  ;;  %v486_v57 = vsel %vm1388_vm11, %v484_v54, -1e+30 }
 0x1a1   : > { %v487_v58 = vmul.f32 1.442695, %v485_v56  ;;  %v489_v59 = vmul.f32 1.442695, %v486_v57 }
 0x1a2   : > { %v514_v60 = vpop.trf.xlu1 }
 0x1a3   : > { %1094 = vpow2.f32 %v487_v58 }
 0x1a4   : > { %1096 = vpow2.f32 %v489_v59 }
 0x1a6   : > { %v515_v61 = vpop.trf.xlu1 }
 0x1aa   : > { %v1093_v62 = vpop.eup %1092  ;;  %v516_v63 = vpop.trf.xlu1 }
 0x1ab   : > { %v1406_v0 = vrot.slane %v1093_v62, %v480_v46 }
 0x1ad   : > { %v1095_v1 = vpop.eup %1094 }
 0x1ae   : > { %v1097_v2 = vpop.eup %1096  ;;  %v517_v3 = vpop.trf.xlu1 }
 0x1af   : > { %v1010_v4 = vpack.c.bf16 %v1097_v2, %v1095_v1 }
 0x1b1   : > { %1011 = vmatprep.subr.bf16.mxu0 %v1010_v4  ;;  %1014 = vmatprep.subr.bf16.mxu1 %v1010_v4 }
 0x1b2   : > { %1013 = vmatpush3.bf16.msra.mxu0 %v1010_v4  ;;  %1015 = vmatpush3.bf16.msra.mxu1 %v1010_v4  ;;  %v518_v5 = vpop.trf.xlu1 }
 0x1b5   : > { %979 = vmatmul.mubr.msk.f32.vlgmr.msra.gmra.mrb[2].mxu0 %vm523_vm7, %v508_v33  ;;  %988 = vmatmul.mubr.msk.f32.vlgmr.msra.gmra.mrb[0].mxu1 %vm523_vm7, %v514_v60 }
 0x1b6   : > { %981 = vmatprep.mubr.msk.f32.mxu0 %vm523_vm7, %v509_v38  ;;  %990 = vmatprep.mubr.msk.f32.mxu1 %vm523_vm7, %v515_v61  ;;  %v519_v6 = vpop.trf.xlu1 }
 0x1b9   : > { %982 = vmatmul.mubr.msk.f32.gmra.mrb[4].mxu0 %vm523_vm7, %v510_v41  ;;  %991 = vmatmul.mubr.msk.f32.gmra.mrb[2].mxu1 %vm523_vm7, %v516_v63 }
 0x1ba   : > { %984 = vmatprep.mubr.msk.f32.mxu0 %vm523_vm7, %v511_v44  ;;  %993 = vmatprep.mubr.msk.f32.mxu1 %vm523_vm7, %v517_v3  ;;  %v520_v7 = vpop.trf.xlu1 }
 0x1bd   : > { %985 = vmatmul.mubr.msk.f32.gmra.mrb[6].mxu0 %vm523_vm7, %v512_v49  ;;  %994 = vmatmul.mubr.msk.f32.gmra.mrb[4].mxu1 %vm523_vm7, %v518_v5 }
 0x1be   : > { %996 = vmatprep.mubr.msk.f32.mxu1 %vm523_vm7, %v519_v6  ;;  %v521_v8 = vpop.trf.xlu1 }
 0x1c1   : > { %997 = vmatmul.mubr.msk.f32.gmra.mrb[6].mxu1 %vm523_vm7, %v520_v7 }
 0x1c2   : > { %999 = vmatprep.mubr.msk.f32.mxu1 %vm523_vm7, %v521_v8  ;;  %v522_v9 = vpop.trf.xlu1 }
 0x1c5   : > { %1000 = vmatmul.mubr.msk.f32.gmra.mrb[8].mxu1 %vm523_vm7, %v522_v9 }
 0x1c6   : > { %1111 = shalt.err (!%p1108_p10)
}
 0x1c7   : > { %s1112_s22 = scalar_lea.hbm %s1426_s15, 16  ;;  %s1116_s29 = scalar_lea.hbm %s1545_s5, 32 }
 0x1c8   : > { %p1113_p11 = scmp.ne.s32.totalorder %s1426_s15, %s1112_s22  ;;  %p1117_p0 = scmp.lt.u32.totalorder %s1426_s15, %s1545_s5 }
 0x1c9   : > { %p1118_p1 = scmp.lt.u32.totalorder %s1116_s29, %s1112_s22  ;;  %p1120_p4 = scmp.lt.u32.totalorder %s1112_s22, %s1426_s15 }
 0x1ca   : > { %p1114_p12 = pnand %p1113_p11, %p1277_p3 }
 0x1cb   : > { %p1119_p2 = por %p1118_p1, %p1117_p0 }
 0x1cc   : > { %p1115_p13 = pneg %p1114_p12 }
 0x1cd   : > { %p1121_p5 = por %p1120_p4, %p1119_p2 }
 0x1cf   : > { %p1122_p6 = pnand %p1121_p5, %p1115_p13 }
 0x1d1   : > { %1125 = shalt.err (!%p1122_p6)
}
 0x1d2   : > { %1016 = dma.vmem_to_hbm [thread:$0]  (%p1277_p3), %s809_s16, 16, %s1426_s15, %s793_s26   ;;  %v718_v10 = vld [vmem:[%s1309_s27 + $0x8] sm:$0xff]  ;;  %v724_v11 = vld [vmem:[%s1309_s27 + $0x38] sm:$0xff]  ;;  %v717_v12 = vld [vmem:[%s1309_s27] sm:$0xff] }
 0x1d3   : > { %v723_v13 = vld [vmem:[%s1309_s27 + $0x30] sm:$0xff]  ;;  %v740_v14 = vmul.f32 %v1406_v0, %v718_v10  ;;  %v746_v15 = vmul.f32 %v1406_v0, %v724_v11  ;;  %v739_v18 = vmul.f32 %v1406_v0, %v717_v12  ;;  %v720_v20 = vld [vmem:[%s1309_s27 + $0x18] sm:$0xff]  ;;  %v726_v21 = vld [vmem:[%s1309_s27 + $0x48] sm:$0xff] }
 0x1d4   : > { %v745_v19 = vmul.f32 %v1406_v0, %v723_v13  ;;  %v719_v26 = vld [vmem:[%s1309_s27 + $0x10] sm:$0xff]  ;;  %v725_v27 = vld [vmem:[%s1309_s27 + $0x40] sm:$0xff]  ;;  %v742_v30 = vmul.f32 %v1406_v0, %v720_v20  ;;  %v748_v31 = vmul.f32 %v1406_v0, %v726_v21  ;;  %v722_v36 = vld [vmem:[%s1309_s27 + $0x28] sm:$0xff] }
 0x1d5   : > { %v741_v34 = vmul.f32 %v1406_v0, %v719_v26  ;;  %v747_v35 = vmul.f32 %v1406_v0, %v725_v27  ;;  %v728_v37 = vld [vmem:[%s1309_s27 + $0x58] sm:$0xff]  ;;  %v721_v42 = vld [vmem:[%s1309_s27 + $0x20] sm:$0xff]  ;;  %v727_v43 = vld [vmem:[%s1309_s27 + $0x50] sm:$0xff]  ;;  %v744_v46 = vmul.f32 %v1406_v0, %v722_v36 }
 0x1d6   : > { %v750_v47 = vmul.f32 %v1406_v0, %v728_v37  ;;  %v743_v50 = vmul.f32 %v1406_v0, %v721_v42  ;;  %v749_v51 = vmul.f32 %v1406_v0, %v727_v43  ;;  %v730_v52 = vld [vmem:[%s1309_s27 + $0x68] sm:$0xff]  ;;  %v729_v57 = vld [vmem:[%s1309_s27 + $0x60] sm:$0xff]  ;;  %v732_v63 = vld [vmem:[%s1309_s27 + $0x78] sm:$0xff] }
 0x1d7   : > { %v752_v60 = vmul.f32 %v1406_v0, %v730_v52  ;;  %v751_v62 = vmul.f32 %v1406_v0, %v729_v57  ;;  %v731_v3 = vld [vmem:[%s1309_s27 + $0x70] sm:$0xff]  ;;  %v754_v5 = vmul.f32 %v1406_v0, %v732_v63 }
 0x1d8   : > { %v753_v7 = vmul.f32 %v1406_v0, %v731_v3 }
 0x288   : > { %v980_v16 = vpop.f32.mrb[2].mxu0  ;;  %v989_v17 = vpop.f32.mrb[0].mxu1 }
 0x289   : > { %v756_v22 = vadd.f32 %v980_v16, %v740_v14  ;;  %v762_v23 = vadd.f32 %v989_v17, %v746_v15  ;;  %v638_v24 = vpop.f32.mrb[3].mxu0  ;;  %v668_v25 = vpop.f32.mrb[1].mxu1 }
 0x28a   : > { %v755_v28 = vadd.f32 %v739_v18, %v638_v24  ;;  %v761_v29 = vadd.f32 %v745_v19, %v668_v25 }
 0x28b   : > { %772 = vst.msk [vmem:[%s1309_s27 + $0x8] sm:$0xff] %vm460_vm12, %v756_v22  ;;  %778 = vst.msk [vmem:[%s1309_s27 + $0x38] sm:$0xff] %vm460_vm12, %v762_v23 }
 0x28c   : > { %771 = vst.msk [vmem:[%s1309_s27] sm:$0xff] %vm460_vm12, %v755_v28  ;;  %777 = vst.msk [vmem:[%s1309_s27 + $0x30] sm:$0xff] %vm460_vm12, %v761_v29  ;;  %v983_v32 = vpop.f32.mrb[4].mxu0  ;;  %v992_v33 = vpop.f32.mrb[2].mxu1 }
 0x28d   : > { %v758_v38 = vadd.f32 %v983_v32, %v742_v30  ;;  %v764_v39 = vadd.f32 %v992_v33, %v748_v31  ;;  %v648_v40 = vpop.f32.mrb[5].mxu0  ;;  %v678_v41 = vpop.f32.mrb[3].mxu1 }
 0x28e   : > { %v757_v44 = vadd.f32 %v741_v34, %v648_v40  ;;  %v763_v45 = vadd.f32 %v747_v35, %v678_v41 }
 0x28f   : > { %774 = vst.msk [vmem:[%s1309_s27 + $0x18] sm:$0xff] %vm460_vm12, %v758_v38  ;;  %780 = vst.msk [vmem:[%s1309_s27 + $0x48] sm:$0xff] %vm460_vm12, %v764_v39 }
 0x290   : > { %773 = vst.msk [vmem:[%s1309_s27 + $0x10] sm:$0xff] %vm460_vm12, %v757_v44  ;;  %779 = vst.msk [vmem:[%s1309_s27 + $0x40] sm:$0xff] %vm460_vm12, %v763_v45  ;;  %v986_v48 = vpop.f32.mrb[6].mxu0  ;;  %v995_v49 = vpop.f32.mrb[4].mxu1 }
 0x291   : > { %v760_v53 = vadd.f32 %v986_v48, %v744_v46  ;;  %v766_v54 = vadd.f32 %v995_v49, %v750_v47  ;;  %v658_v55 = vpop.f32.mrb[7].mxu0  ;;  %v688_v56 = vpop.f32.mrb[5].mxu1 }
 0x292   : > { %v759_v58 = vadd.f32 %v743_v50, %v658_v55  ;;  %v765_v59 = vadd.f32 %v749_v51, %v688_v56 }
 0x293   : > { %776 = vst.msk [vmem:[%s1309_s27 + $0x28] sm:$0xff] %vm460_vm12, %v760_v53  ;;  %782 = vst.msk [vmem:[%s1309_s27 + $0x58] sm:$0xff] %vm460_vm12, %v766_v54 }
 0x294   : > { %775 = vst.msk [vmem:[%s1309_s27 + $0x20] sm:$0xff] %vm460_vm12, %v759_v58  ;;  %781 = vst.msk [vmem:[%s1309_s27 + $0x50] sm:$0xff] %vm460_vm12, %v765_v59  ;;  %v998_v61 = vpop.f32.mrb[6].mxu1 }
 0x295   : > { %v768_v1 = vadd.f32 %v998_v61, %v752_v60  ;;  %v698_v2 = vpop.f32.mrb[7].mxu1 }
 0x296   : > { %v767_v4 = vadd.f32 %v751_v62, %v698_v2 }
 0x297   : > { %784 = vst.msk [vmem:[%s1309_s27 + $0x68] sm:$0xff] %vm460_vm12, %v768_v1 }
 0x298   : > { %783 = vst.msk [vmem:[%s1309_s27 + $0x60] sm:$0xff] %vm460_vm12, %v767_v4  ;;  %v1001_v6 = vpop.f32.mrb[8].mxu1 }
 0x299   : > { %v770_v8 = vadd.f32 %v1001_v6, %v754_v5  ;;  %v708_v9 = vpop.f32.mrb[9].mxu1 }
 0x29a   : > { %v769_v10 = vadd.f32 %v753_v7, %v708_v9 }
 0x29b   : > { %786 = vst.msk [vmem:[%s1309_s27 + $0x78] sm:$0xff] %vm460_vm12, %v770_v8 }
 0x29c   : > { %785 = vst.msk [vmem:[%s1309_s27 + $0x70] sm:$0xff] %vm460_vm12, %v769_v10 }
 0x29d PF: > { %p1022_p3 = scmp.ge.s32.totalorder %s1192_s25, 2  ;;  %s828_s30 = sand.u32 1, %s1164_s18  }
 0x29e   : > { %s829_s14 = scalar_lea.sflag [#allocation3], %s828_s30 }
 0x29f   : > { %p1019_p7 = pnand %p1022_p3, %p1287_p9 }
 0x2a1   : > { %1159 = dma.done.wait (!%p1019_p7), %s829_s14, 16  }
 0x2a2   : > { %1161 = vsyncadd (!%p1019_p7), %s829_s14, 4294967280  ;;  %s19_s25 = sadd.s32 1, %s1192_s25   ;;  %s1557_s27 = sld [smem:[#allocation5_spill]] }
 0x2a3   : > { %p16_p8 = scmp.ge.s32.totalorder %s19_s25, 6   ;;  %s1558_s15 = sld [smem:[#allocation6_spill]] }
 0x2a4   : > { %s1559_s18 = smov %s1168_s19  ;;  %s1560_s19 = smov %s1172_s20 }
 0x2a5   : > { %s1561_s20 = smov %s1295_s9  ;;  %s1562_s21 = smov %s1184_s23 }
 0x2a6   : > { %s1563_s22 = smov %s1188_s24  ;;  %18 = sbr.rel (!%p16_p8) target bundleno = 5 (0x5), region = 87 }
 0x2a8   : > { %s1564_s23 = smov %s1557_s27 }
 0x2a9   : > { %s1565_s24 = smov %s1558_s15 }
 0x2ad   :  { %833 = vsyncpa [#allocation3], 1 }
 0x2ae   :  { %835 = vsyncpa [#allocation3 + $0x1], 1 }

</bundles_post_ra>
